<compile_context>
chip_gen: v7x
topology: tpu7x:2x2x1
jax: 0.10.0
libtpu: 0.0.40
codegen_flags: <defaults>
</compile_context>

<pallas_src>
import functools
import math

import jax
import jax.numpy as jnp
from jax.experimental import pallas as pl
from jax.experimental.pallas import tpu as pltpu


def _layernorm(x, gamma, beta, eps=1e-5):
    # Matches torch.nn.LayerNorm over the last dim (biased variance, eps inside rsqrt).
    # var via E[x^2] - mu^2 so the two cross-lane reductions are independent.
    mu = jnp.mean(x, axis=-1, keepdims=True)
    ex2 = jnp.mean(x * x, axis=-1, keepdims=True)
    var = ex2 - mu * mu
    return (x - mu) * jax.lax.rsqrt(var + eps) * gamma + beta


def encoder_kernel(matmul_dtype, n_heads,
                   x_ref,
                   wqkv_ref, bqkv_ref,      # fused QKV (scale pre-folded into Wq/bq)
                   wo_ref, bo_ref,
                   g1_ref, be1_ref,
                   w1_ref, b1_ref, w2_ref, b2_ref,
                   g2_ref, be2_ref,
                   o_ref):
    f32 = jnp.float32
    bb, S, D = x_ref.shape                      # batch-block, seq, d_model
    nH = n_heads
    dh = D // nH
    BS = bb * S
    G = nH * bb                                 # combined (head, batch) attention axis

    # (bb, S, D) -> (bb*S, D): leading-dim collapse only (layout-free).
    x = x_ref[...].astype(f32).reshape(BS, D)
    xm = x.astype(matmul_dtype)

    # ---- fused QKV projection: ONE MXU push, 96 output lanes --------------------
    qkv = jnp.dot(xm, wqkv_ref[...], preferred_element_type=f32) + bqkv_ref[...]
    qkv_m = qkv.astype(matmul_dtype)            # single hoisted cast (no-op for f32)

    q = qkv_m[:, :D]                            # lane slices (within-vreg shifts)
    k = qkv_m[:, D:2 * D]
    v = qkv_m[:, 2 * D:3 * D]

    # ---- head split: a few single-vreg lane slices, then free leading reshapes ---
    def heads(t):                               # (BS, D) -> (nH*bb, S, dh)
        hs = [t[:, h * dh:(h + 1) * dh] for h in range(nH)]
        return jnp.stack(hs, axis=0).reshape(G, S, dh)

    qh, kh, vh = heads(q), heads(k), heads(v)

    # ---- attention core: single batched score/softmax/PV over (bb*nH) ------------
    # 1/sqrt(dh) scale already folded into Wq/bq, so scores come out pre-scaled.
    s = jnp.einsum("gqe,gke->gqk", qh, kh, preferred_element_type=f32)   # (G, S, S)
    s = s - jnp.max(s, axis=-1, keepdims=True)
    p = jnp.exp(s)
    p = p * pl.reciprocal(jnp.sum(p, axis=-1, keepdims=True), approx=True)

    pv = jnp.einsum("gqk,gke->gqe", p.astype(matmul_dtype), vh,
                    preferred_element_type=f32)                          # (G, S, dh)

    # ---- head merge + output projection: ONE MXU push against the original Wo ----
    pv4 = pv.reshape(nH, bb, S, dh)                                      # free split
    merged = jnp.concatenate([pv4[h] for h in range(nH)], axis=-1)       # (bb, S, D)
    attn = jnp.dot(merged.reshape(BS, D).astype(matmul_dtype), wo_ref[...],
                   preferred_element_type=f32) + bo_ref[...]             # (BS, D)

    # ---- residual + LayerNorm 1 (f32 elementwise; v5e has no bf16 VPU/EUP) -------
    y = _layernorm(x + attn, g1_ref[...], be1_ref[...])

    # ---- feed-forward: Linear(D->H) -> Dropout -> Linear(H->D) -------------------
    # TODO(synk): nn.Dropout is identity in eval mode; train-mode dropout not implemented.
    h1 = jnp.dot(y.astype(matmul_dtype), w1_ref[...],
                 preferred_element_type=f32) + b1_ref[...]
    ff = jnp.dot(h1.astype(matmul_dtype), w2_ref[...],
                 preferred_element_type=f32) + b2_ref[...]

    # ---- residual + LayerNorm 2 ---------------------------------------------------
    z = _layernorm(y + ff, g2_ref[...], be2_ref[...])

    # D=32 (<128 lanes) => masked store; see lane-dense note at the top of the file.
    o_ref[...] = z.reshape(bb, S, D).astype(o_ref.dtype)


def encoder_forward(x, params, n_heads, *, batch_block=None,
                    matmul_dtype=jnp.float32):
    """Run the encoder block.

    batch_block: batches per kernel invocation. Default = full batch (one invocation,
                 lowest overhead). Do NOT split at tiny shapes; only use B//2 on v7x
                 when each core gets substantial work.
    matmul_dtype: jnp.float32 (default, bit-faithful, best at small contracting dims)
                  or jnp.bfloat16 (v6e/v7x MXU fast path once D/H reach ~128+).
                  Accumulation and all elementwise math stay f32 either way; the
                  bf16 path is only validated against a matched-precision reference.
    """
    B, S, D = x.shape
    H = params["w1"].shape[1]
    dh = D // n_heads
    bb = B if batch_block is None else batch_block
    assert B % bb == 0, "batch_block must divide batch"
    nb = B // bb

    # One-time repack OUTSIDE the kernel (plain XLA ops, amortized across calls):
    # fuse [Wq|Wk|Wv] -> (D, 3D) and fold the 1/sqrt(dh) softmax scale into Wq/bq.
    scale = 1.0 / math.sqrt(dh)
    wqkv = jnp.concatenate(
        [params["wq"] * scale, params["wk"], params["wv"]], axis=1).astype(matmul_dtype)
    bqkv = jnp.concatenate(
        [params["bq"] * scale, params["bk"], params["bv"]], axis=1)       # stays f32
    wo = params["wo"].astype(matmul_dtype)
    w1 = params["w1"].astype(matmul_dtype)
    w2 = params["w2"].astype(matmul_dtype)

    def rep(shape):
        # Full-array block whose index never changes across the (tiny) grid.
        return pl.BlockSpec(shape, lambda i, _n=len(shape): (0,) * _n)

    in_specs = [
        pl.BlockSpec((bb, S, D), lambda i: (i, 0, 0)),          # x
        rep((D, 3 * D)), rep((1, 3 * D)),                       # Wqkv, bqkv
        rep((D, D)), rep((1, D)),                               # Wo, bo
        rep((1, D)), rep((1, D)),                               # ln1 gamma, beta
        rep((D, H)), rep((1, H)),                               # W1, b1
        rep((H, D)), rep((1, D)),                               # W2, b2
        rep((1, D)), rep((1, D)),                               # ln2 gamma, beta
    ]

    return pl.pallas_call(
        functools.partial(encoder_kernel, matmul_dtype, n_heads),
        out_shape=jax.ShapeDtypeStruct((B, S, D), x.dtype),
        grid=(nb,),
        in_specs=in_specs,
        out_specs=pl.BlockSpec((bb, S, D), lambda i: (i, 0, 0)),
        compiler_params=pltpu.CompilerParams(dimension_semantics=("parallel",)),
    )(
        x,
        wqkv, bqkv, wo, params["bo"],
        params["ln1_g"], params["ln1_b"],
        w1, params["b1"], w2, params["b2"],
        params["ln2_g"], params["ln2_b"],
    )


def encoder_reference(x, params, n_heads, matmul_dtype=jnp.float32):
    """Pure-JAX reference (same cast points, f32 accumulation) for correctness checks."""
    B, S, D = x.shape
    dh = D // n_heads
    f32 = jnp.float32
    xf = x.astype(f32)

    def mm(a, b):
        return jnp.dot(a.astype(matmul_dtype), b.astype(matmul_dtype),
                       preferred_element_type=f32)

    q = mm(xf, params["wq"]) + params["bq"]
    k = mm(xf, params["wk"]) + params["bk"]
    v = mm(xf, params["wv"]) + params["bv"]

    def split(t):  # (B,S,D) -> (B,nH,S,dh)
        return t.reshape(B, S, n_heads, dh).transpose(0, 2, 1, 3)

    qh, kh, vh = split(q), split(k), split(v)
    s = jnp.einsum("bhqd,bhkd->bhqk", qh.astype(matmul_dtype), kh.astype(matmul_dtype),
                   preferred_element_type=f32) / math.sqrt(dh)
    p = jax.nn.softmax(s, axis=-1)
    attn = jnp.einsum("bhqk,bhkd->bhqd", p.astype(matmul_dtype), vh.astype(matmul_dtype),
                      preferred_element_type=f32)
    attn = attn.transpose(0, 2, 1, 3).reshape(B, S, D)
    attn = mm(attn, params["wo"]) + params["bo"]

    def ln(t, g, b):
        mu = jnp.mean(t, axis=-1, keepdims=True)
        var = jnp.mean((t - mu) ** 2, axis=-1, keepdims=True)
        return (t - mu) * jax.lax.rsqrt(var + 1e-5) * g + b

    y = ln(xf + attn, params["ln1_g"], params["ln1_b"])
    h1 = mm(y, params["w1"]) + params["b1"]
    ff = mm(h1, params["w2"]) + params["b2"]
    y = ln(y + ff, params["ln2_g"], params["ln2_b"])
    return y.astype(x.dtype)


if __name__ == "__main__":
    # Small shapes implied by the module: seq=8, d_model=32, n_hidden=64, n_heads=4.
    B, S, D, H, NH = 2, 8, 32, 64, 4

    key = jax.random.PRNGKey(0)
    keys = jax.random.split(key, 12)
    scale = 0.1

    params = {
        "wq": scale * jax.random.normal(keys[0], (D, D), jnp.float32),
        "bq": scale * jax.random.normal(keys[1], (1, D), jnp.float32),
        "wk": scale * jax.random.normal(keys[2], (D, D), jnp.float32),
        "bk": scale * jax.random.normal(keys[3], (1, D), jnp.float32),
        "wv": scale * jax.random.normal(keys[4], (D, D), jnp.float32),
        "bv": scale * jax.random.normal(keys[5], (1, D), jnp.float32),
        "wo": scale * jax.random.normal(keys[6], (D, D), jnp.float32),
        "bo": scale * jax.random.normal(keys[7], (1, D), jnp.float32),
        "ln1_g": jnp.ones((1, D), jnp.float32),
        "ln1_b": jnp.zeros((1, D), jnp.float32),
        "w1": scale * jax.random.normal(keys[8], (D, H), jnp.float32),
        "b1": scale * jax.random.normal(keys[9], (1, H), jnp.float32),
        "w2": scale * jax.random.normal(keys[10], (H, D), jnp.float32),
        "b2": scale * jax.random.normal(keys[11], (1, D), jnp.float32),
        "ln2_g": jnp.ones((1, D), jnp.float32),
        "ln2_b": jnp.zeros((1, D), jnp.float32),
    }

    x = jax.random.normal(jax.random.PRNGKey(42), (B, S, D), jnp.float32)

    # 1) Default path: single invocation (grid=(1,)), f32 matmuls.
    out = jax.block_until_ready(encoder_forward(x, params, NH))
    ref = encoder_reference(x, params, NH)
    assert out.shape == (B, S, D)
    assert jnp.allclose(out, ref, atol=1e-2, rtol=1e-2), "f32 path mismatch vs reference"

    # 2) bf16-matmul-input path (only worthwhile at larger D/H; correctness check only).
    out_bf16 = jax.block_until_ready(
        encoder_forward(x, params, NH, matmul_dtype=jnp.bfloat16))
    ref_bf16 = encoder_reference(x, params, NH, matmul_dtype=jnp.bfloat16)
    assert jnp.allclose(out_bf16, ref_bf16, atol=2e-2, rtol=2e-2), \
        "bf16 path mismatch vs matched-precision reference"

    # 3) Multi-block grid path (correctness only; not recommended for perf at this size).
    out_2 = jax.block_until_ready(encoder_forward(x, params, NH, batch_block=B // 2))
    assert jnp.allclose(out_2, ref, atol=1e-2, rtol=1e-2), "multi-block path mismatch"

    print("KERNEL_OK")
</pallas_src>

<mosaic_0001>
module attributes {stable_mosaic.version = 11 : i64} {
  func.func @encoder_kernel(%arg0: i32, %arg1: memref<2x8x32xf32, #tpu.memory_space<vmem>>, %arg2: memref<32x96xf32, #tpu.memory_space<vmem>>, %arg3: memref<1x96xf32, #tpu.memory_space<vmem>>, %arg4: memref<32x32xf32, #tpu.memory_space<vmem>>, %arg5: memref<1x32xf32, #tpu.memory_space<vmem>>, %arg6: memref<1x32xf32, #tpu.memory_space<vmem>>, %arg7: memref<1x32xf32, #tpu.memory_space<vmem>>, %arg8: memref<32x64xf32, #tpu.memory_space<vmem>>, %arg9: memref<1x64xf32, #tpu.memory_space<vmem>>, %arg10: memref<64x32xf32, #tpu.memory_space<vmem>>, %arg11: memref<1x32xf32, #tpu.memory_space<vmem>>, %arg12: memref<1x32xf32, #tpu.memory_space<vmem>>, %arg13: memref<1x32xf32, #tpu.memory_space<vmem>>, %arg14: memref<2x8x32xf32, #tpu.memory_space<vmem>>) attributes {dimension_semantics = [#tpu.dimension_semantics<parallel>], iteration_bounds = array<i64: 1>, scalar_prefetch = 0 : i64, scratch_operands = 0 : i64, tpu.core_type = #tpu.core_type<tc>, window_params = [{transform_indices = @transform_0, window_bounds = array<i64: 2, 8, 32>}, {pipeline_mode = #tpu.pipeline_mode<synchronous>, transform_indices = @transform_1, window_bounds = array<i64: 32, 96>}, {pipeline_mode = #tpu.pipeline_mode<synchronous>, transform_indices = @transform_2, window_bounds = array<i64: 1, 96>}, {pipeline_mode = #tpu.pipeline_mode<synchronous>, transform_indices = @transform_3, window_bounds = array<i64: 32, 32>}, {pipeline_mode = #tpu.pipeline_mode<synchronous>, transform_indices = @transform_4, window_bounds = array<i64: 1, 32>}, {pipeline_mode = #tpu.pipeline_mode<synchronous>, transform_indices = @transform_5, window_bounds = array<i64: 1, 32>}, {pipeline_mode = #tpu.pipeline_mode<synchronous>, transform_indices = @transform_6, window_bounds = array<i64: 1, 32>}, {pipeline_mode = #tpu.pipeline_mode<synchronous>, transform_indices = @transform_7, window_bounds = array<i64: 32, 64>}, {pipeline_mode = #tpu.pipeline_mode<synchronous>, transform_indices = @transform_8, window_bounds = array<i64: 1, 64>}, {pipeline_mode = #tpu.pipeline_mode<synchronous>, transform_indices = @transform_9, window_bounds = array<i64: 64, 32>}, {pipeline_mode = #tpu.pipeline_mode<synchronous>, transform_indices = @transform_10, window_bounds = array<i64: 1, 32>}, {pipeline_mode = #tpu.pipeline_mode<synchronous>, transform_indices = @transform_11, window_bounds = array<i64: 1, 32>}, {pipeline_mode = #tpu.pipeline_mode<synchronous>, transform_indices = @transform_12, window_bounds = array<i64: 1, 32>}, {transform_indices = @transform_13, window_bounds = array<i64: 2, 8, 32>}]} {
    %c0 = arith.constant 0 : index
    %c0_0 = arith.constant 0 : index
    %c0_1 = arith.constant 0 : index
    %0 = vector.load %arg1[%c0, %c0_0, %c0_1] : memref<2x8x32xf32, #tpu.memory_space<vmem>>, vector<2x8x32xf32>
    %1 = vector.shape_cast %0 : vector<2x8x32xf32> to vector<16x32xf32>
    %c0_2 = arith.constant 0 : index
    %c0_3 = arith.constant 0 : index
    %2 = vector.load %arg2[%c0_2, %c0_3] : memref<32x96xf32, #tpu.memory_space<vmem>>, vector<32x96xf32>
    %cst = arith.constant dense<0.000000e+00> : vector<16x96xf32>
    %3 = tpu.matmul %1, %2, %cst {dimension_numbers = #tpu.dot_dimension_numbers<[1], [0], [0], [1], [0, 0, 1, 1], [], []>} : vector<16x32xf32>, vector<32x96xf32>, vector<16x96xf32> -> vector<16x96xf32>
    %c0_4 = arith.constant 0 : index
    %c0_5 = arith.constant 0 : index
    %4 = vector.load %arg3[%c0_4, %c0_5] : memref<1x96xf32, #tpu.memory_space<vmem>>, vector<1x96xf32>
    %5 = vector.broadcast %4 : vector<1x96xf32> to vector<16x96xf32>
    %6 = arith.addf %3, %5 : vector<16x96xf32>
    %7 = vector.extract_strided_slice %6 {offsets = [0, 0], sizes = [16, 32], strides = [1, 1]} : vector<16x96xf32> to vector<16x32xf32>
    %8 = vector.extract_strided_slice %6 {offsets = [0, 32], sizes = [16, 32], strides = [1, 1]} : vector<16x96xf32> to vector<16x32xf32>
    %9 = vector.extract_strided_slice %6 {offsets = [0, 64], sizes = [16, 32], strides = [1, 1]} : vector<16x96xf32> to vector<16x32xf32>
    %10 = vector.extract_strided_slice %7 {offsets = [0, 0], sizes = [16, 8], strides = [1, 1]} : vector<16x32xf32> to vector<16x8xf32>
    %11 = vector.extract_strided_slice %7 {offsets = [0, 8], sizes = [16, 8], strides = [1, 1]} : vector<16x32xf32> to vector<16x8xf32>
    %12 = vector.extract_strided_slice %7 {offsets = [0, 16], sizes = [16, 8], strides = [1, 1]} : vector<16x32xf32> to vector<16x8xf32>
    %13 = vector.extract_strided_slice %7 {offsets = [0, 24], sizes = [16, 8], strides = [1, 1]} : vector<16x32xf32> to vector<16x8xf32>
    %14 = vector.shape_cast %10 : vector<16x8xf32> to vector<1x16x8xf32>
    %15 = vector.shape_cast %11 : vector<16x8xf32> to vector<1x16x8xf32>
    %16 = vector.shape_cast %12 : vector<16x8xf32> to vector<1x16x8xf32>
    %17 = vector.shape_cast %13 : vector<16x8xf32> to vector<1x16x8xf32>
    %18 = tpu.concatenate %14, %15, %16, %17 in 0 : vector<1x16x8xf32>, vector<1x16x8xf32>, vector<1x16x8xf32>, vector<1x16x8xf32> -> vector<4x16x8xf32>
    %19 = vector.shape_cast %18 : vector<4x16x8xf32> to vector<8x8x8xf32>
    %20 = vector.extract_strided_slice %8 {offsets = [0, 0], sizes = [16, 8], strides = [1, 1]} : vector<16x32xf32> to vector<16x8xf32>
    %21 = vector.extract_strided_slice %8 {offsets = [0, 8], sizes = [16, 8], strides = [1, 1]} : vector<16x32xf32> to vector<16x8xf32>
    %22 = vector.extract_strided_slice %8 {offsets = [0, 16], sizes = [16, 8], strides = [1, 1]} : vector<16x32xf32> to vector<16x8xf32>
    %23 = vector.extract_strided_slice %8 {offsets = [0, 24], sizes = [16, 8], strides = [1, 1]} : vector<16x32xf32> to vector<16x8xf32>
    %24 = vector.shape_cast %20 : vector<16x8xf32> to vector<1x16x8xf32>
    %25 = vector.shape_cast %21 : vector<16x8xf32> to vector<1x16x8xf32>
    %26 = vector.shape_cast %22 : vector<16x8xf32> to vector<1x16x8xf32>
    %27 = vector.shape_cast %23 : vector<16x8xf32> to vector<1x16x8xf32>
    %28 = tpu.concatenate %24, %25, %26, %27 in 0 : vector<1x16x8xf32>, vector<1x16x8xf32>, vector<1x16x8xf32>, vector<1x16x8xf32> -> vector<4x16x8xf32>
    %29 = vector.shape_cast %28 : vector<4x16x8xf32> to vector<8x8x8xf32>
    %30 = vector.extract_strided_slice %9 {offsets = [0, 0], sizes = [16, 8], strides = [1, 1]} : vector<16x32xf32> to vector<16x8xf32>
    %31 = vector.extract_strided_slice %9 {offsets = [0, 8], sizes = [16, 8], strides = [1, 1]} : vector<16x32xf32> to vector<16x8xf32>
    %32 = vector.extract_strided_slice %9 {offsets = [0, 16], sizes = [16, 8], strides = [1, 1]} : vector<16x32xf32> to vector<16x8xf32>
    %33 = vector.extract_strided_slice %9 {offsets = [0, 24], sizes = [16, 8], strides = [1, 1]} : vector<16x32xf32> to vector<16x8xf32>
    %34 = vector.shape_cast %30 : vector<16x8xf32> to vector<1x16x8xf32>
    %35 = vector.shape_cast %31 : vector<16x8xf32> to vector<1x16x8xf32>
    %36 = vector.shape_cast %32 : vector<16x8xf32> to vector<1x16x8xf32>
    %37 = vector.shape_cast %33 : vector<16x8xf32> to vector<1x16x8xf32>
    %38 = tpu.concatenate %34, %35, %36, %37 in 0 : vector<1x16x8xf32>, vector<1x16x8xf32>, vector<1x16x8xf32>, vector<1x16x8xf32> -> vector<4x16x8xf32>
    %39 = vector.shape_cast %38 : vector<4x16x8xf32> to vector<8x8x8xf32>
    "tpu.trace_start"() <{level = 10 : i32, message = "gqe,gke->gqk"}> : () -> ()
    %cst_6 = arith.constant dense<0.000000e+00> : vector<8x8x8xf32>
    %40 = tpu.matmul %19, %29, %cst_6 {dimension_numbers = #tpu.dot_dimension_numbers<[2], [2], [1], [1], [0, 0, 0, 1, 1, 1], [0], [0]>} : vector<8x8x8xf32>, vector<8x8x8xf32>, vector<8x8x8xf32> -> vector<8x8x8xf32>
    "tpu.trace_stop"() : () -> ()
    %cst_7 = arith.constant dense<0xFF800000> : vector<8x8xf32>
    %41 = vector.multi_reduction <maximumf>, %40, %cst_7 [2] : vector<8x8x8xf32> to vector<8x8xf32>
    %42 = vector.shape_cast %41 : vector<8x8xf32> to vector<8x8x1xf32>
    %43 = vector.broadcast %42 : vector<8x8x1xf32> to vector<8x8x8xf32>
    %44 = arith.subf %40, %43 : vector<8x8x8xf32>
    %45 = math.exp %44 : vector<8x8x8xf32>
    %cst_8 = arith.constant dense<0.000000e+00> : vector<8x8xf32>
    %46 = vector.multi_reduction <add>, %45, %cst_8 [2] : vector<8x8x8xf32> to vector<8x8xf32>
    %47 = vector.shape_cast %46 : vector<8x8xf32> to vector<8x8x1xf32>
    %48 = tpu.reciprocal %47 {approx = true} : vector<8x8x1xf32> -> vector<8x8x1xf32>
    %49 = vector.broadcast %48 : vector<8x8x1xf32> to vector<8x8x8xf32>
    %50 = arith.mulf %45, %49 : vector<8x8x8xf32>
    "tpu.trace_start"() <{level = 10 : i32, message = "gqk,gke->gqe"}> : () -> ()
    %cst_9 = arith.constant dense<0.000000e+00> : vector<8x8x8xf32>
    %51 = tpu.matmul %50, %39, %cst_9 {dimension_numbers = #tpu.dot_dimension_numbers<[2], [1], [1], [2], [0, 0, 0, 1, 1, 2], [0], [0]>} : vector<8x8x8xf32>, vector<8x8x8xf32>, vector<8x8x8xf32> -> vector<8x8x8xf32>
    "tpu.trace_stop"() : () -> ()
    %52 = vector.shape_cast %51 : vector<8x8x8xf32> to vector<4x2x8x8xf32>
    %53 = vector.extract_strided_slice %52 {offsets = [0, 0, 0, 0], sizes = [1, 2, 8, 8], strides = [1, 1, 1, 1]} : vector<4x2x8x8xf32> to vector<1x2x8x8xf32>
    %54 = vector.shape_cast %53 : vector<1x2x8x8xf32> to vector<2x8x8xf32>
    %55 = vector.extract_strided_slice %52 {offsets = [1, 0, 0, 0], sizes = [1, 2, 8, 8], strides = [1, 1, 1, 1]} : vector<4x2x8x8xf32> to vector<1x2x8x8xf32>
    %56 = vector.shape_cast %55 : vector<1x2x8x8xf32> to vector<2x8x8xf32>
    %57 = vector.extract_strided_slice %52 {offsets = [2, 0, 0, 0], sizes = [1, 2, 8, 8], strides = [1, 1, 1, 1]} : vector<4x2x8x8xf32> to vector<1x2x8x8xf32>
    %58 = vector.shape_cast %57 : vector<1x2x8x8xf32> to vector<2x8x8xf32>
    %59 = vector.extract_strided_slice %52 {offsets = [3, 0, 0, 0], sizes = [1, 2, 8, 8], strides = [1, 1, 1, 1]} : vector<4x2x8x8xf32> to vector<1x2x8x8xf32>
    %60 = vector.shape_cast %59 : vector<1x2x8x8xf32> to vector<2x8x8xf32>
    %61 = tpu.concatenate %54, %56, %58, %60 in 2 : vector<2x8x8xf32>, vector<2x8x8xf32>, vector<2x8x8xf32>, vector<2x8x8xf32> -> vector<2x8x32xf32>
    %62 = vector.shape_cast %61 : vector<2x8x32xf32> to vector<16x32xf32>
    %c0_10 = arith.constant 0 : index
    %c0_11 = arith.constant 0 : index
    %63 = vector.load %arg4[%c0_10, %c0_11] : memref<32x32xf32, #tpu.memory_space<vmem>>, vector<32x32xf32>
    %cst_12 = arith.constant dense<0.000000e+00> : vector<16x32xf32>
    %64 = tpu.matmul %62, %63, %cst_12 {dimension_numbers = #tpu.dot_dimension_numbers<[1], [0], [0], [1], [0, 0, 1, 1], [], []>} : vector<16x32xf32>, vector<32x32xf32>, vector<16x32xf32> -> vector<16x32xf32>
    %c0_13 = arith.constant 0 : index
    %c0_14 = arith.constant 0 : index
    %65 = vector.load %arg5[%c0_13, %c0_14] : memref<1x32xf32, #tpu.memory_space<vmem>>, vector<1x32xf32>
    %66 = vector.broadcast %65 : vector<1x32xf32> to vector<16x32xf32>
    %67 = arith.addf %64, %66 : vector<16x32xf32>
    %68 = arith.addf %1, %67 : vector<16x32xf32>
    %c0_15 = arith.constant 0 : index
    %c0_16 = arith.constant 0 : index
    %69 = vector.load %arg6[%c0_15, %c0_16] : memref<1x32xf32, #tpu.memory_space<vmem>>, vector<1x32xf32>
    %c0_17 = arith.constant 0 : index
    %c0_18 = arith.constant 0 : index
    %70 = vector.load %arg7[%c0_17, %c0_18] : memref<1x32xf32, #tpu.memory_space<vmem>>, vector<1x32xf32>
    %cst_19 = arith.constant dense<0.000000e+00> : vector<16xf32>
    %71 = vector.multi_reduction <add>, %68, %cst_19 [1] : vector<16x32xf32> to vector<16xf32>
    %72 = vector.shape_cast %71 : vector<16xf32> to vector<16x1xf32>
    %cst_20 = arith.constant 3.200000e+01 : f32
    %73 = vector.broadcast %cst_20 : f32 to vector<16x1xf32>
    %74 = arith.divf %72, %73 : vector<16x1xf32>
    %75 = arith.mulf %68, %68 : vector<16x32xf32>
    %cst_21 = arith.constant dense<0.000000e+00> : vector<16xf32>
    %76 = vector.multi_reduction <add>, %75, %cst_21 [1] : vector<16x32xf32> to vector<16xf32>
    %77 = vector.shape_cast %76 : vector<16xf32> to vector<16x1xf32>
    %cst_22 = arith.constant 3.200000e+01 : f32
    %78 = vector.broadcast %cst_22 : f32 to vector<16x1xf32>
    %79 = arith.divf %77, %78 : vector<16x1xf32>
    %80 = arith.mulf %74, %74 : vector<16x1xf32>
    %81 = arith.subf %79, %80 : vector<16x1xf32>
    %82 = vector.broadcast %74 : vector<16x1xf32> to vector<16x32xf32>
    %83 = arith.subf %68, %82 : vector<16x32xf32>
    %cst_23 = arith.constant 9.99999974E-6 : f32
    %84 = vector.broadcast %cst_23 : f32 to vector<16x1xf32>
    %85 = arith.addf %81, %84 : vector<16x1xf32>
    %86 = math.rsqrt %85 : vector<16x1xf32>
    %87 = vector.broadcast %86 : vector<16x1xf32> to vector<16x32xf32>
    %88 = arith.mulf %83, %87 : vector<16x32xf32>
    %89 = vector.broadcast %69 : vector<1x32xf32> to vector<16x32xf32>
    %90 = arith.mulf %88, %89 : vector<16x32xf32>
    %91 = vector.broadcast %70 : vector<1x32xf32> to vector<16x32xf32>
    %92 = arith.addf %90, %91 : vector<16x32xf32>
    %c0_24 = arith.constant 0 : index
    %c0_25 = arith.constant 0 : index
    %93 = vector.load %arg8[%c0_24, %c0_25] : memref<32x64xf32, #tpu.memory_space<vmem>>, vector<32x64xf32>
    %cst_26 = arith.constant dense<0.000000e+00> : vector<16x64xf32>
    %94 = tpu.matmul %92, %93, %cst_26 {dimension_numbers = #tpu.dot_dimension_numbers<[1], [0], [0], [1], [0, 0, 1, 1], [], []>} : vector<16x32xf32>, vector<32x64xf32>, vector<16x64xf32> -> vector<16x64xf32>
    %c0_27 = arith.constant 0 : index
    %c0_28 = arith.constant 0 : index
    %95 = vector.load %arg9[%c0_27, %c0_28] : memref<1x64xf32, #tpu.memory_space<vmem>>, vector<1x64xf32>
    %96 = vector.broadcast %95 : vector<1x64xf32> to vector<16x64xf32>
    %97 = arith.addf %94, %96 : vector<16x64xf32>
    %c0_29 = arith.constant 0 : index
    %c0_30 = arith.constant 0 : index
    %98 = vector.load %arg10[%c0_29, %c0_30] : memref<64x32xf32, #tpu.memory_space<vmem>>, vector<64x32xf32>
    %cst_31 = arith.constant dense<0.000000e+00> : vector<16x32xf32>
    %99 = tpu.matmul %97, %98, %cst_31 {dimension_numbers = #tpu.dot_dimension_numbers<[1], [0], [0], [1], [0, 0, 1, 1], [], []>} : vector<16x64xf32>, vector<64x32xf32>, vector<16x32xf32> -> vector<16x32xf32>
    %c0_32 = arith.constant 0 : index
    %c0_33 = arith.constant 0 : index
    %100 = vector.load %arg11[%c0_32, %c0_33] : memref<1x32xf32, #tpu.memory_space<vmem>>, vector<1x32xf32>
    %101 = vector.broadcast %100 : vector<1x32xf32> to vector<16x32xf32>
    %102 = arith.addf %99, %101 : vector<16x32xf32>
    %103 = arith.addf %92, %102 : vector<16x32xf32>
    %c0_34 = arith.constant 0 : index
    %c0_35 = arith.constant 0 : index
    %104 = vector.load %arg12[%c0_34, %c0_35] : memref<1x32xf32, #tpu.memory_space<vmem>>, vector<1x32xf32>
    %c0_36 = arith.constant 0 : index
    %c0_37 = arith.constant 0 : index
    %105 = vector.load %arg13[%c0_36, %c0_37] : memref<1x32xf32, #tpu.memory_space<vmem>>, vector<1x32xf32>
    %cst_38 = arith.constant dense<0.000000e+00> : vector<16xf32>
    %106 = vector.multi_reduction <add>, %103, %cst_38 [1] : vector<16x32xf32> to vector<16xf32>
    %107 = vector.shape_cast %106 : vector<16xf32> to vector<16x1xf32>
    %cst_39 = arith.constant 3.200000e+01 : f32
    %108 = vector.broadcast %cst_39 : f32 to vector<16x1xf32>
    %109 = arith.divf %107, %108 : vector<16x1xf32>
    %110 = arith.mulf %103, %103 : vector<16x32xf32>
    %cst_40 = arith.constant dense<0.000000e+00> : vector<16xf32>
    %111 = vector.multi_reduction <add>, %110, %cst_40 [1] : vector<16x32xf32> to vector<16xf32>
    %112 = vector.shape_cast %111 : vector<16xf32> to vector<16x1xf32>
    %cst_41 = arith.constant 3.200000e+01 : f32
    %113 = vector.broadcast %cst_41 : f32 to vector<16x1xf32>
    %114 = arith.divf %112, %113 : vector<16x1xf32>
    %115 = arith.mulf %109, %109 : vector<16x1xf32>
    %116 = arith.subf %114, %115 : vector<16x1xf32>
    %117 = vector.broadcast %109 : vector<16x1xf32> to vector<16x32xf32>
    %118 = arith.subf %103, %117 : vector<16x32xf32>
    %cst_42 = arith.constant 9.99999974E-6 : f32
    %119 = vector.broadcast %cst_42 : f32 to vector<16x1xf32>
    %120 = arith.addf %116, %119 : vector<16x1xf32>
    %121 = math.rsqrt %120 : vector<16x1xf32>
    %122 = vector.broadcast %121 : vector<16x1xf32> to vector<16x32xf32>
    %123 = arith.mulf %118, %122 : vector<16x32xf32>
    %124 = vector.broadcast %104 : vector<1x32xf32> to vector<16x32xf32>
    %125 = arith.mulf %123, %124 : vector<16x32xf32>
    %126 = vector.broadcast %105 : vector<1x32xf32> to vector<16x32xf32>
    %127 = arith.addf %125, %126 : vector<16x32xf32>
    %128 = vector.shape_cast %127 : vector<16x32xf32> to vector<2x8x32xf32>
    %c0_43 = arith.constant 0 : index
    %c0_44 = arith.constant 0 : index
    %c0_45 = arith.constant 0 : index
    %129 = vector.load %arg14[%c0_43, %c0_44, %c0_45] : memref<2x8x32xf32, #tpu.memory_space<vmem>>, vector<2x8x32xf32>
    tpu.vector_store %arg14[%c0_43, %c0_44, %c0_45], %128 {strides = array<i32>} : memref<2x8x32xf32, #tpu.memory_space<vmem>>, vector<2x8x32xf32>,
    return
  }
  func.func @transform_0(%arg0: i32) -> (i32, i32, i32) {
    %c0_i32 = arith.constant 0 : i32
    %c0_i32_0 = arith.constant 0 : i32
    %c0_i32_1 = arith.constant 0 : i32
    return %arg0, %c0_i32, %c0_i32_0 : i32, i32, i32
  }
  func.func @transform_1(%arg0: i32) -> (i32, i32) {
    %c0_i32 = arith.constant 0 : i32
    %c0_i32_0 = arith.constant 0 : i32
    %c0_i32_1 = arith.constant 0 : i32
    return %c0_i32, %c0_i32_0 : i32, i32
  }
  func.func @transform_2(%arg0: i32) -> (i32, i32) {
    %c0_i32 = arith.constant 0 : i32
    %c0_i32_0 = arith.constant 0 : i32
    %c0_i32_1 = arith.constant 0 : i32
    return %c0_i32, %c0_i32_0 : i32, i32
  }
  func.func @transform_3(%arg0: i32) -> (i32, i32) {
    %c0_i32 = arith.constant 0 : i32
    %c0_i32_0 = arith.constant 0 : i32
    %c0_i32_1 = arith.constant 0 : i32
    return %c0_i32, %c0_i32_0 : i32, i32
  }
  func.func @transform_4(%arg0: i32) -> (i32, i32) {
    %c0_i32 = arith.constant 0 : i32
    %c0_i32_0 = arith.constant 0 : i32
    %c0_i32_1 = arith.constant 0 : i32
    return %c0_i32, %c0_i32_0 : i32, i32
  }
  func.func @transform_5(%arg0: i32) -> (i32, i32) {
    %c0_i32 = arith.constant 0 : i32
    %c0_i32_0 = arith.constant 0 : i32
    %c0_i32_1 = arith.constant 0 : i32
    return %c0_i32, %c0_i32_0 : i32, i32
  }
  func.func @transform_6(%arg0: i32) -> (i32, i32) {
    %c0_i32 = arith.constant 0 : i32
    %c0_i32_0 = arith.constant 0 : i32
    %c0_i32_1 = arith.constant 0 : i32
    return %c0_i32, %c0_i32_0 : i32, i32
  }
  func.func @transform_7(%arg0: i32) -> (i32, i32) {
    %c0_i32 = arith.constant 0 : i32
    %c0_i32_0 = arith.constant 0 : i32
    %c0_i32_1 = arith.constant 0 : i32
    return %c0_i32, %c0_i32_0 : i32, i32
  }
  func.func @transform_8(%arg0: i32) -> (i32, i32) {
    %c0_i32 = arith.constant 0 : i32
    %c0_i32_0 = arith.constant 0 : i32
    %c0_i32_1 = arith.constant 0 : i32
    return %c0_i32, %c0_i32_0 : i32, i32
  }
  func.func @transform_9(%arg0: i32) -> (i32, i32) {
    %c0_i32 = arith.constant 0 : i32
    %c0_i32_0 = arith.constant 0 : i32
    %c0_i32_1 = arith.constant 0 : i32
    return %c0_i32, %c0_i32_0 : i32, i32
  }
  func.func @transform_10(%arg0: i32) -> (i32, i32) {
    %c0_i32 = arith.constant 0 : i32
    %c0_i32_0 = arith.constant 0 : i32
    %c0_i32_1 = arith.constant 0 : i32
    return %c0_i32, %c0_i32_0 : i32, i32
  }
  func.func @transform_11(%arg0: i32) -> (i32, i32) {
    %c0_i32 = arith.constant 0 : i32
    %c0_i32_0 = arith.constant 0 : i32
    %c0_i32_1 = arith.constant 0 : i32
    return %c0_i32, %c0_i32_0 : i32, i32
  }
  func.func @transform_12(%arg0: i32) -> (i32, i32) {
    %c0_i32 = arith.constant 0 : i32
    %c0_i32_0 = arith.constant 0 : i32
    %c0_i32_1 = arith.constant 0 : i32
    return %c0_i32, %c0_i32_0 : i32, i32
  }
  func.func @transform_13(%arg0: i32) -> (i32, i32, i32) {
    %c0_i32 = arith.constant 0 : i32
    %c0_i32_0 = arith.constant 0 : i32
    %c0_i32_1 = arith.constant 0 : i32
    return %arg0, %c0_i32, %c0_i32_0 : i32, i32, i32
  }
}

</mosaic_0001>

<bundles_post_ra>
// kernel: tpu_custom_call.1
= control target key start
LH: loop header
LB: loop body
LE: loop exit
PB: predicated region body
PF: predicated region fallthrough
CT: control target
= control target key end

     0   :  { %18 = vsyncpa [#allocation3], 0  ;;  %s2805_s0 = inlined_call_operand.hbm [shape: f32[2,8,32], index: 0, kind: input, shape index: {}]   ;;  %s2806_s1 = inlined_call_operand.vmem [shape: f32[32,96], index: 1, kind: input, shape index: {}]   ;;  %s2807_s2 = inlined_call_operand.vmem [shape: f32[1,96], index: 2, kind: input, shape index: {}]   ;;  %s2808_s3 = inlined_call_operand.vmem [shape: f32[32,32], index: 3, kind: input, shape index: {}]   ;;  %s2809_s4 = inlined_call_operand.vmem [shape: f32[1,32], index: 4, kind: input, shape index: {}]   ;;  %s2810_s5 = inlined_call_operand.hbm [shape: f32[1,32], index: 5, kind: input, shape index: {}]   ;;  %s2811_s6 = inlined_call_operand.hbm [shape: f32[1,32], index: 6, kind: input, shape index: {}]   ;;  %s2812_s7 = inlined_call_operand.vmem [shape: f32[32,64], index: 7, kind: input, shape index: {}]   ;;  %s2813_s8 = inlined_call_operand.hbm [shape: f32[1,64], index: 8, kind: input, shape index: {}]   ;;  %s2814_s9 = inlined_call_operand.vmem [shape: f32[64,32], index: 9, kind: input, shape index: {}]   ;;  %s2815_s10 = inlined_call_operand.vmem [shape: f32[1,32], index: 10, kind: input, shape index: {}]   ;;  %s2816_s11 = inlined_call_operand.vmem [shape: f32[1,32], index: 11, kind: input, shape index: {}]   ;;  %s2817_s12 = inlined_call_operand.vmem [shape: f32[1,32], index: 12, kind: input, shape index: {}]   ;;  %s2818_s13 = inlined_call_operand.hbm [shape: f32[2,8,32], index: 13, kind: output, shape index: {}]  }
   0x1   :  { %19 = vsyncpa [#allocation6], 0 }
   0x2   :  { %20 = vsyncpa [#allocation9], 0 }
   0x3   :  { %21 = vsyncpa [#allocation4], 0  ;;  %s2389_s25 = smov [#allocation5]   ;;  %s2390_s27 = smov [#allocation2]  }
   0x4   :  { %s48_s26 = sshll.u32 %s2389_s25, 4  ;;  %s27_s28 = sshll.u32 %s2390_s27, 4  ;;  %s49_s26 = int_to_ptr.vmem [resolvable:$true] %s48_s26  ;;  %s2475_s28 = int_to_ptr.vmem [resolvable:$true] %s27_s28 }
   0x5   :  { %s2271_s14 = scalar_lea.hbm %s2810_s5, 16 }
   0x6   :  { %p2272_p0 = scmp.ne.s32.totalorder %s2810_s5, %s2271_s14  ;;  %p2275_p1 = scmp.lt.u32.totalorder %s2271_s14, %s2810_s5 }
   0x8   :  { %p2277_p2 = pnand %p2275_p1, %p2272_p0 }
   0xa   :  { %2280 = shalt.err (!%p2277_p2)
}
   0xb   :  { %s2281_s19 = scalar_lea.vmem %s49_s26, 16  ;;  %s2285_s20 = scalar_lea.vmem %s49_s26, 32 }
   0xc   :  { %p2282_p3 = scmp.ne.s32.totalorder %s49_s26, %s2281_s19  ;;  %p2286_p4 = scmp.lt.s32.totalorder %s49_s26, %s49_s26 }
   0xd   :  { %p2287_p5 = scmp.lt.s32.totalorder %s2285_s20, %s2281_s19 }
   0xf   :  { %p2288_p6 = por %p2287_p5, %p2286_p4 }
  0x11   :  { %p2289_p7 = pnand %p2288_p6, %p2282_p3 }
  0x13   :  { %2292 = shalt.err (!%p2289_p7)
}
  0x14   :  { %51 = dma.hbm_to_vmem [thread:$0]  %s2810_s5, 16, %s49_s26, [#allocation6]  }
  0x15   :  { %s2293_s25 = scalar_lea.hbm %s2805_s0, 256 }
  0x16   :  { %p2294_p8 = scmp.ne.s32.totalorder %s2805_s0, %s2293_s25  ;;  %p2297_p9 = scmp.lt.u32.totalorder %s2293_s25, %s2805_s0 }
  0x18   :  { %p2299_p10 = pnand %p2297_p9, %p2294_p8 }
  0x1a   :  { %2302 = shalt.err (!%p2299_p10)
}
  0x1b   :  { %s2303_s15 = scalar_lea.vmem %s2475_s28, 256  ;;  %p2308_p12 = scmp.lt.s32.totalorder %s2475_s28, %s2475_s28 }
  0x1c   :  { %p2304_p11 = scmp.ne.s32.totalorder %s2475_s28, %s2303_s15  ;;  %p2309_p13 = scmp.lt.s32.totalorder %s2303_s15, %s2303_s15 }
  0x1e   :  { %p2310_p0 = por %p2309_p13, %p2308_p12 }
  0x20   :  { %p2311_p1 = pnand %p2310_p0, %p2304_p11 }
  0x22   :  { %2314 = shalt.err (!%p2311_p1)
}
  0x23   :  { %s2391_s5 = smov 128   ;;  %s2392_s26 = smov 8  }
  0x24   :  { %33 = dma.hbm_to_vmem [thread:$0]  %s2805_s0, 256, %s2475_s28, [#allocation3], %s2391_s5, %s2391_s5, %s2392_s26  }
  0x25   :  { %s2393_s18 = smov [#allocation7]   ;;  %s2394_s20 = smov [#allocation8]  }
  0x26   :  { %s58_s19 = sshll.u32 %s2393_s18, 4  ;;  %s70_s21 = sshll.u32 %s2394_s20, 4  ;;  %s59_s19 = int_to_ptr.vmem [resolvable:$true] %s58_s19  ;;  %s71_s21 = int_to_ptr.vmem [resolvable:$true] %s70_s21 }
  0x27   :  { %s2315_s24 = scalar_lea.hbm %s2811_s6, 16 }
  0x28   :  { %p2316_p2 = scmp.ne.s32.totalorder %s2811_s6, %s2315_s24  ;;  %p2319_p3 = scmp.lt.u32.totalorder %s2315_s24, %s2811_s6 }
  0x2a   :  { %p2321_p4 = pnand %p2319_p3, %p2316_p2 }
  0x2c   :  { %2324 = shalt.err (!%p2321_p4)
}
  0x2d   :  { %s2325_s0 = scalar_lea.vmem %s59_s19, 16  ;;  %s2329_s28 = scalar_lea.vmem %s59_s19, 32 }
  0x2e   :  { %p2326_p5 = scmp.ne.s32.totalorder %s59_s19, %s2325_s0  ;;  %p2330_p6 = scmp.lt.s32.totalorder %s59_s19, %s59_s19 }
  0x2f   :  { %p2331_p7 = scmp.lt.s32.totalorder %s2329_s28, %s2325_s0 }
  0x31   :  { %p2332_p8 = por %p2331_p7, %p2330_p6 }
  0x33   :  { %p2333_p9 = pnand %p2332_p8, %p2326_p5 }
  0x35   :  { %2336 = shalt.err (!%p2333_p9)
}
  0x36   :  { %61 = dma.hbm_to_vmem [thread:$0]  %s2811_s6, 16, %s59_s19, [#allocation6]  }
  0x37   :  { %s2337_s18 = scalar_lea.hbm %s2813_s8, 16 }
  0x38   :  { %p2338_p10 = scmp.ne.s32.totalorder %s2813_s8, %s2337_s18  ;;  %p2341_p11 = scmp.lt.u32.totalorder %s2337_s18, %s2813_s8 }
  0x3a   :  { %p2343_p12 = pnand %p2341_p11, %p2338_p10 }
  0x3c   :  { %2346 = shalt.err (!%p2343_p12)
}
  0x3d   :  { %s2347_s25 = scalar_lea.vmem %s71_s21, 16  ;;  %s2351_s27 = scalar_lea.vmem %s71_s21, 32 }
  0x3e   :  { %p2348_p13 = scmp.ne.s32.totalorder %s71_s21, %s2347_s25  ;;  %p2352_p0 = scmp.lt.s32.totalorder %s71_s21, %s71_s21 }
  0x3f   :  { %p2353_p1 = scmp.lt.s32.totalorder %s2351_s27, %s2347_s25 }
  0x41   :  { %p2354_p2 = por %p2353_p1, %p2352_p0 }
  0x43   :  { %p2355_p3 = pnand %p2354_p2, %p2348_p13 }
  0x45   :  { %2358 = shalt.err (!%p2355_p3)
}
  0x46   :  { %73 = dma.hbm_to_vmem [thread:$0]  %s2813_s8, 16, %s71_s21, [#allocation9]  }
  0x47   :  { %2381 = dma.done.wait [#allocation3], 256  }
  0x48   :  { %2382 = vsyncadd [#allocation3], 4294967040 }
  0x49   :  { %2383 = dma.done.wait [#allocation6], 32  }
  0x4a   :  { %2384 = vsyncadd [#allocation6], 4294967264 }
  0x4b   :  { %2385 = dma.done.wait [#allocation9], 16  }
  0x4c   :  { %2386 = vsyncadd [#allocation9], 4294967280  ;;  %vm107_vm0 = vcmask 261120   ;;  %v96_v0 = vld [vmem:[%s2806_s1] sm:$0xff]  ;;  %v97_v1 = vld [vmem:[%s2806_s1 + $0x8] sm:$0xff]  ;;  %v2395_v10 = vmov 0.0  }
  0x4d   :  { %v98_v2 = vld [vmem:[%s2806_s1 + $0x10] sm:$0xff]  ;;  %v2175_v3 = vpack.c.bf16 %v97_v1, %v96_v0  ;;  %v99_v4 = vld [vmem:[%s2806_s1 + $0x18] sm:$0xff]  ;;  %v2545_v5 = vld [vmem:[#allocation2] sm:$0xff]  ;;  %2064 = vmatprep.subr.mxu0 %v2395_v10  ;;  %s2396_s1 = smov 112   ;;  %s2397_s18 = smov 120   ;;  %vm2398_vm1 = vmmov 0  }
  0x4e   :  { %v2179_v6 = vpack.c.bf16 %v99_v4, %v98_v2  ;;  %2051 = vmatprep.mubr.msk.f32.mxu1 %vm107_vm0, %v2545_v5  ;;  %v2549_v7 = vld [vmem:[#allocation2 + $0x8] sm:$0xff]  ;;  %v1943_v8 = vld [vmem:[%s2807_s2] ss:$0 sm:$0xff]  ;;  %2066 = vmatprep.mubr.msk.f32.mxu0 %vm2398_vm1, %v2395_v10  ;;  %s2399_s2 = smov 104   ;;  %s2400_s20 = smov 96   ;;  %vm205_vm2 = vcmask 64512  }
  0x4f   :  { %2176 = vmatprep.subr.bf16.mxu1 %v2175_v3  ;;  %s2401_s22 = smov 64   ;;  %s2402_s0 = smov 16   ;;  %vm1534_vm3 = vcmask 130048   ;;  %vm1537_vm4 = vcmask 195584   ;;  %vm1790_vm5 = vcmask 523264  }
  0x50   :  { %2178 = vmatpush3.bf16.msra.mxu1 %v2175_v3  ;;  %s2403_s28 = smov 24   ;;  %s2404_s16 = smov [#allocation10]  }
  0x51   :  { %2180 = vmatprep.subr.bf16.mxu1 %v2179_v6  ;;  %s1929_s17 = sshll.u32 %s2404_s16, 4  ;;  %s1930_s17 = int_to_ptr.vmem [resolvable:$true] %s1929_s17 }
  0x52   :  { %p2364_p5 = scmp.lt.s32.totalorder %s1930_s17, %s1930_s17 }
  0x54   :  { %2182 = vmatpush3.bf16.msra.mxu1 %v2179_v6 }
  0x55   :  { %2054 = vmatprep.subr.mxu1 %v2395_v10 }
  0x57   :  { %2052 = vmatmul.mubr.msk.f32.vlgmr.msra.gmra.mrb[0].mxu1 %vm107_vm0, %v2549_v7 }
  0x58   :  { %2056 = vmatprep.mubr.msk.f32.mxu1 %vm2398_vm1, %v2395_v10 }
 0x12a   :  { %v2053_v9 = vpop.f32.mrb[0].mxu1 }
 0x12b   :  { %v180_v11 = vpop.f32.mrb[1].mxu1  ;;  %v2566_v13 = vadd.f32 %v2053_v9, %v1943_v8 }
 0x12c   :  { %v2558_v12 = vadd.f32 %v1943_v8, %v180_v11 }
 0x12e   :  { %195 = vrot.lane.b32.xlu1 %v2558_v12, %s2396_s1  ;;  %191 = vrot.lane.b32.xlu0 %v2558_v12, %s2397_s18 }
 0x132   :  { %197 = vrot.lane.b32.xlu1 %v2566_v13, %s2396_s1  ;;  %193 = vrot.lane.b32.xlu0 %v2566_v13, %s2397_s18  ;;  %s2359_s1 = scalar_lea.vmem %s1930_s17, 256 }
 0x133   :  { %p2360_p4 = scmp.ne.s32.totalorder %s1930_s17, %s2359_s1  ;;  %p2365_p6 = scmp.lt.s32.totalorder %s2359_s1, %s2359_s1 }
 0x135   :  { %p2366_p7 = por %p2365_p6, %p2364_p5 }
 0x136   :  { %201 = vrot.lane.b32.xlu1 %v2566_v13, %s2399_s2  ;;  %199 = vrot.lane.b32.xlu0 %v2558_v12, %s2399_s2 }
 0x137   :  { %p2367_p8 = pnand %p2366_p7, %p2360_p4 }
 0x13a   :  { %280 = vrot.lane.b32.xlu1 %v2566_v13, %s2400_s20  ;;  %203 = vrot.lane.b32.xlu0 %v2558_v12, %s2400_s20 }
 0x1a0   :  { %v2574_v14 = vpop.permute.xlu1 %195  ;;  %v2576_v15 = vpop.permute.xlu0 %191 }
 0x1a1   :  { %356 = vrot.lane.b32.xlu0 %v2576_v15, %s2400_s20 }
 0x1a4   :  { %v2579_v16 = vpop.permute.xlu1 %197  ;;  %v2581_v17 = vpop.permute.xlu0 %193 }
 0x1a5   :  { %508 = vrot.lane.b32.xlu0 %v2574_v14, %s2400_s20  ;;  %432 = vrot.lane.b32.xlu1 %v2581_v17, %s2400_s20 }
 0x1a8   :  { %v2585_v18 = vpop.permute.xlu0 %199  ;;  %v2589_v19 = vpop.permute.xlu1 %201 }
 0x1a9   :  { %584 = vrot.lane.b32.xlu1 %v2579_v16, %s2400_s20  ;;  %660 = vrot.lane.b32.xlu0 %v2585_v18, %s2400_s20 }
 0x1ac   :  { %v204_v20 = vpop.permute.xlu0 %203  ;;  %v281_v21 = vpop.permute.xlu1 %280 }
 0x1ad   :  { %736 = vrot.lane.b32.xlu1 %v2589_v19, %s2400_s20  ;;  %2055 = vmatpush3.xpose.msk.msra.mxu1 %vm205_vm2, %v204_v20 }
 0x1ae   :  { %2059 = vmatprep.subr.mxu1 %v2395_v10 }
 0x1b0   :  { %2057 = vmatmul.mubr.msk.f32.vlgmr.msra.gmra.mrb[2].mxu1 %vm205_vm2, %v2558_v12 }
 0x1b1   :  { %2060 = vmatpush3.xpose.msk.msra.mxu1 %vm205_vm2, %v281_v21  ;;  %2061 = vmatprep.mubr.msk.f32.mxu1 %vm2398_vm1, %v2395_v10 }
 0x1b2   :  { %2069 = vmatprep.subr.mxu1 %v2395_v10 }
 0x1b4   :  { %2062 = vmatmul.mubr.msk.f32.vlgmr.msra.gmra.mrb[4].mxu1 %vm205_vm2, %v2566_v13 }
 0x1b5   :  { %2071 = vmatprep.mubr.msk.f32.mxu1 %vm2398_vm1, %v2395_v10 }
 0x213   :  { %v357_v22 = vpop.permute.xlu0 %356 }
 0x214   :  { %2065 = vmatpush3.xpose.msk.msra.mxu0 %vm205_vm2, %v357_v22 }
 0x215   :  { %2074 = vmatprep.subr.mxu0 %v2395_v10 }
 0x217   :  { %v433_v23 = vpop.permute.xlu1 %432  ;;  %2067 = vmatmul.mubr.msk.f32.vlgmr.msra.gmra.mrb[0].mxu0 %vm205_vm2, %v2576_v15  ;;  %v509_v24 = vpop.permute.xlu0 %508 }
 0x218   :  { %2070 = vmatpush3.xpose.msk.msra.mxu1 %vm205_vm2, %v433_v23  ;;  %2075 = vmatpush3.xpose.msk.msra.mxu0 %vm205_vm2, %v509_v24 }
 0x219   :  { %2076 = vmatprep.mubr.msk.f32.mxu0 %vm2398_vm1, %v2395_v10  ;;  %2079 = vmatprep.subr.mxu1 %v2395_v10 }
 0x21a   :  { %2084 = vmatprep.subr.mxu0 %v2395_v10 }
 0x21b   :  { %v585_v25 = vpop.permute.xlu1 %584  ;;  %2072 = vmatmul.mubr.msk.f32.vlgmr.msra.gmra.mrb[6].mxu1 %vm205_vm2, %v2581_v17  ;;  %2077 = vmatmul.mubr.msk.f32.vlgmr.msra.gmra.mrb[2].mxu0 %vm205_vm2, %v2574_v14  ;;  %v661_v26 = vpop.permute.xlu0 %660 }
 0x21c   :  { %2080 = vmatpush3.xpose.msk.msra.mxu1 %vm205_vm2, %v585_v25  ;;  %2085 = vmatpush3.xpose.msk.msra.mxu0 %vm205_vm2, %v661_v26 }
 0x21d   :  { %2081 = vmatprep.mubr.msk.f32.mxu1 %vm2398_vm1, %v2395_v10  ;;  %2086 = vmatprep.mubr.msk.f32.mxu0 %vm2398_vm1, %v2395_v10 }
 0x21e   :  { %2089 = vmatprep.subr.mxu1 %v2395_v10  ;;  %2094 = vmatprep.subr.mxu0 %v2395_v10 }
 0x21f   :  { %v737_v27 = vpop.permute.xlu1 %736  ;;  %2082 = vmatmul.mubr.msk.f32.vlgmr.msra.gmra.mrb[8].mxu1 %vm205_vm2, %v2579_v16  ;;  %2087 = vmatmul.mubr.msk.f32.vlgmr.msra.gmra.mrb[4].mxu0 %vm205_vm2, %v2585_v18 }
 0x220   :  { %2090 = vmatpush3.xpose.msk.msra.mxu1 %vm205_vm2, %v737_v27  ;;  %2091 = vmatprep.mubr.msk.f32.mxu1 %vm2398_vm1, %v2395_v10 }
 0x221   :  { %2099 = vmatprep.subr.mxu1 %v2395_v10  ;;  %2096 = vmatprep.mubr.msk.f32.mxu0 %vm2398_vm1, %v2395_v10 }
 0x223   :  { %2092 = vmatmul.mubr.msk.f32.vlgmr.msra.gmra.mrb[10].mxu1 %vm205_vm2, %v2589_v19 }
 0x224   :  { %2101 = vmatprep.mubr.msk.f32.mxu1 %vm2398_vm1, %v2395_v10 }
 0x283   :  { %v276_v28 = vpop.f32.mrb[2].mxu1 }
 0x284   :  { %v2058_v29 = vpop.f32.mrb[3].mxu1  ;;  %v812_v30 = vsel %vm205_vm2, %v276_v28, -inf }
 0x285   :  { %813 = vmax.xlane.f32.xlu0 %v812_v30 }
 0x287   :  { %v352_v31 = vpop.f32.mrb[4].mxu1 }
 0x288   :  { %v2063_v32 = vpop.f32.mrb[5].mxu1  ;;  %v815_v33 = vsel %vm205_vm2, %v352_v31, -inf }
 0x289   :  { %816 = vmax.xlane.f32.xlu1 %v815_v33 }
 0x2ea   :  { %v428_v34 = vpop.f32.mrb[0].mxu0 }
 0x2eb   :  { %v2068_v35 = vpop.f32.mrb[1].mxu0  ;;  %v818_v36 = vsel %vm205_vm2, %v428_v34, -inf }
 0x2ec   :  { %819 = vmax.xlane.f32.xlu0 %v818_v36 }
 0x2ee   :  { %v504_v37 = vpop.f32.mrb[6].mxu1  ;;  %v580_v38 = vpop.f32.mrb[2].mxu0 }
 0x2ef   :  { %v2073_v39 = vpop.f32.mrb[7].mxu1  ;;  %v2078_v40 = vpop.f32.mrb[3].mxu0  ;;  %v821_v41 = vsel %vm205_vm2, %v504_v37, -inf  ;;  %v824_v42 = vsel %vm205_vm2, %v580_v38, -inf }
 0x2f0   :  { %822 = vmax.xlane.f32.xlu0 %v821_v41  ;;  %825 = vmax.xlane.f32.xlu1 %v824_v42 }
 0x2f2   :  { %v656_v43 = vpop.f32.mrb[8].mxu1  ;;  %v732_v44 = vpop.f32.mrb[4].mxu0 }
 0x2f3   :  { %v2083_v45 = vpop.f32.mrb[9].mxu1  ;;  %v2088_v46 = vpop.f32.mrb[5].mxu0  ;;  %v827_v47 = vsel %vm205_vm2, %v656_v43, -inf  ;;  %v830_v48 = vsel %vm205_vm2, %v732_v44, -inf }
 0x2f4   :  { %828 = vmax.xlane.f32.xlu0 %v827_v47  ;;  %831 = vmax.xlane.f32.xlu1 %v830_v48 }
 0x2f6   :  { %v808_v49 = vpop.f32.mrb[10].mxu1 }
 0x2f7   :  { %v2093_v50 = vpop.f32.mrb[11].mxu1  ;;  %v833_v51 = vsel %vm205_vm2, %v808_v49, -inf }
 0x2f8   :  { %834 = vmax.xlane.f32.xlu0 %v833_v51 }
 0x305   :  { %900 = vrot.lane.b32.xlu1 %v2558_v12, %s2401_s22 }
 0x309   :  { %1052 = vrot.lane.b32.xlu1 %v2576_v15, %s2401_s22 }
 0x30d   :  { %1128 = vrot.lane.b32.xlu1 %v2581_v17, %s2401_s22 }
 0x30e   :  { %976 = vrot.lane.b32.xlu0 %v2566_v13, %s2401_s22 }
 0x311   :  { %1280 = vrot.lane.b32.xlu1 %v2579_v16, %s2401_s22 }
 0x312   :  { %1204 = vrot.lane.b32.xlu0 %v2574_v14, %s2401_s22  ;;  %v814_v54 = vpop.xlane.xlu0 %813 }
 0x313   :  { %v836_v55 = vsub.f32 %v276_v28, %v814_v54 }
 0x315   :  { %v844_v57 = vmul.f32 1.442695, %v836_v55 }
 0x316   :  { %v817_v52 = vpop.xlane.xlu1 %816 }
 0x317   :  { %v837_v53 = vsub.f32 %v352_v31, %v817_v52 }
 0x319   :  { %v846_v56 = vmul.f32 1.442695, %v837_v53 }
 0x31b   :  { %2231 = vpow2.f32 %v846_v56 }
 0x31c   :  { %2233 = vpow2.f32 %v844_v57 }
 0x325   :  { %v2660_v58 = vpop.eup %2231 }
 0x326   :  { %v863_v59 = vsel %vm205_vm2, %v2660_v58, 0.0  ;;  %v2664_v60 = vpop.eup %2233 }
 0x327   :  { %v860_v61 = vsel %vm205_vm2, %v2664_v60, 0.0 }
 0x331   :  { %864 = vadd.xlane.f32.xlu0 %v863_v59 }
 0x335   :  { %861 = vadd.xlane.f32.xlu1 %v860_v61 }
 0x379   :  { %v820_v62 = vpop.xlane.xlu0 %819 }
 0x37a   :  { %v838_v63 = vsub.f32 %v428_v34, %v820_v62 }
 0x37c   :  { %v848_v0 = vmul.f32 1.442695, %v838_v63 }
 0x37d   :  { %v826_v1 = vpop.xlane.xlu1 %825  ;;  %v823_v2 = vpop.xlane.xlu0 %822 }
 0x37e   :  { %2235 = vpow2.f32 %v848_v0  ;;  %v840_v3 = vsub.f32 %v580_v38, %v826_v1  ;;  %v839_v4 = vsub.f32 %v504_v37, %v823_v2 }
 0x380   :  { %v852_v6 = vmul.f32 1.442695, %v840_v3  ;;  %v850_v8 = vmul.f32 1.442695, %v839_v4  ;;  %v1540_v3 = vld [vmem:[%s2808_s3] sm:$0xff]  ;;  %v1541_v4 = vld [vmem:[%s2808_s3 + $0x8] sm:$0xff] }
 0x381   :  { %v832_v9 = vpop.xlane.xlu1 %831  ;;  %v829_v11 = vpop.xlane.xlu0 %828 }
 0x382   :  { %2237 = vpow2.f32 %v852_v6  ;;  %v842_v12 = vsub.f32 %v732_v44, %v832_v9  ;;  %v841_v13 = vsub.f32 %v656_v43, %v829_v11  ;;  %v2183_v6 = vpack.c.bf16 %v1541_v4, %v1540_v3 }
 0x383   :  { %2239 = vpow2.f32 %v850_v8  ;;  %v1543_v8 = vld [vmem:[%s2808_s3 + $0x18] sm:$0xff] }
 0x384   :  { %v856_v14 = vmul.f32 1.442695, %v842_v12  ;;  %v854_v15 = vmul.f32 1.442695, %v841_v13 }
 0x385   :  { %v901_v16 = vpop.permute.xlu1 %900  ;;  %v835_v17 = vpop.xlane.xlu0 %834 }
 0x386   :  { %2241 = vpow2.f32 %v856_v14  ;;  %v843_v20 = vsub.f32 %v808_v49, %v835_v17  ;;  %2095 = vmatpush3.msra.mxu0 %v901_v16 }
 0x387   :  { %2243 = vpow2.f32 %v854_v15  ;;  %2104 = vmatprep.subr.mxu0 %v2395_v10 }
 0x388   :  { %v2236_v21 = vpop.eup %2235  ;;  %v858_v22 = vmul.f32 1.442695, %v843_v20 }
 0x389   :  { %v977_v23 = vpop.permute.xlu0 %976  ;;  %v866_v24 = vsel %vm205_vm2, %v2236_v21, 0.0  ;;  %v1053_v35 = vpop.permute.xlu1 %1052 }
 0x38a   :  { %2245 = vpow2.f32 %v858_v22  ;;  %867 = vadd.xlane.f32.xlu1 %v866_v24  ;;  %2100 = vmatpush3.msra.mxu1 %v977_v23 }
 0x38b   :  { %2109 = vmatprep.subr.mxu1 %v2395_v10 }
 0x38c   :  { %v2238_v25 = vpop.eup %2237 }
 0x38d   :  { %v2240_v26 = vpop.eup %2239  ;;  %v872_v27 = vsel %vm205_vm2, %v2238_v25, 0.0  ;;  %v1129_v36 = vpop.permute.xlu1 %1128 }
 0x38e   :  { %873 = vadd.xlane.f32.xlu1 %v872_v27  ;;  %v869_v28 = vsel %vm205_vm2, %v2240_v26, 0.0  ;;  %v1205_v37 = vpop.permute.xlu0 %1204 }
 0x38f   :  { %870 = vadd.xlane.f32.xlu0 %v869_v28 }
 0x390   :  { %v2242_v29 = vpop.eup %2241 }
 0x391   :  { %v2244_v30 = vpop.eup %2243  ;;  %v878_v31 = vsel %vm205_vm2, %v2242_v29, 0.0  ;;  %v1281_v38 = vpop.permute.xlu1 %1280 }
 0x392   :  { %879 = vadd.xlane.f32.xlu1 %v878_v31  ;;  %v875_v32 = vsel %vm205_vm2, %v2244_v30, 0.0 }
 0x393   :  { %876 = vadd.xlane.f32.xlu0 %v875_v32 }
 0x394   :  { %v2675_v33 = vpop.eup %2245 }
 0x395   :  { %v881_v34 = vsel %vm205_vm2, %v2675_v33, 0.0 }
 0x397   :  { %882 = vadd.xlane.f32.xlu0 %v881_v34 }
 0x3a3   :  { %1432 = vrot.lane.b32.xlu1 %v2589_v19, %s2401_s22 }
 0x3ad   :  { %1356 = vrot.lane.b32.xlu0 %v2585_v18, %s2401_s22 }
 0x3be   :  { %v865_v39 = vpop.xlane.xlu0 %864 }
 0x3bf   :  { %2247 = vrcp.f32 %v865_v39 }
 0x3c2   :  { %v862_v40 = vpop.xlane.xlu1 %861 }
 0x3c3   :  { %2249 = vrcp.f32 %v862_v40 }
 0x3c9   :  { %v2248_v41 = vpop.eup %2247 }
 0x3ca   :  { %v893_v42 = vmul.f32 %v2248_v41, %v2660_v58 }
 0x3cc   :  { %2102 = vmatmul.mubr.msk.f32.vlgmr.msra.gmra.mrb[12].mxu1 %vm205_vm2, %v893_v42 }
 0x3cd   :  { %v2250_v43 = vpop.eup %2249  ;;  %2110 = vmatpush3.msra.mxu1 %v1129_v36  ;;  %2111 = vmatprep.mubr.msk.f32.mxu1 %vm2398_vm1, %v2395_v10 }
 0x3ce   :  { %v892_v18 = vmul.f32 %v2250_v43, %v2664_v60  ;;  %2119 = vmatprep.subr.mxu1 %v2395_v10 }
 0x3d0   :  { %2097 = vmatmul.mubr.msk.f32.vlgmr.msra.gmra.mrb[6].mxu0 %vm205_vm2, %v892_v18 }
 0x3d1   :  { %2105 = vmatpush3.msra.mxu0 %v1053_v35  ;;  %2106 = vmatprep.mubr.msk.f32.mxu0 %vm2398_vm1, %v2395_v10 }
 0x3d2   :  { %2114 = vmatprep.subr.mxu0 %v2395_v10 }
 0x417   :  { %v868_v19 = vpop.xlane.xlu1 %867 }
 0x418   :  { %2251 = vrcp.f32 %v868_v19 }
 0x41b   :  { %v874_v44 = vpop.xlane.xlu1 %873 }
 0x41c   :  { %2253 = vrcp.f32 %v874_v44  ;;  %v871_v45 = vpop.xlane.xlu0 %870 }
 0x41d   :  { %2255 = vrcp.f32 %v871_v45 }
 0x41f   :  { %v880_v46 = vpop.xlane.xlu1 %879 }
 0x420   :  { %2257 = vrcp.f32 %v880_v46  ;;  %v877_v47 = vpop.xlane.xlu0 %876 }
 0x421   :  { %2259 = vrcp.f32 %v877_v47 }
 0x422   :  { %v2252_v48 = vpop.eup %2251 }
 0x423   :  { %v894_v49 = vmul.f32 %v2252_v48, %v2236_v21  ;;  %v1433_v60 = vpop.permute.xlu1 %1432  ;;  %v1685_v48 = vld [vmem:[%s2812_s7 + $0x10] sm:$0xff] }
 0x424   :  { %v883_v50 = vpop.xlane.xlu0 %882 }
 0x425   :  { %2261 = vrcp.f32 %v883_v50  ;;  %2107 = vmatmul.mubr.msk.f32.vlgmr.msra.gmra.mrb[8].mxu0 %vm205_vm2, %v894_v49  ;;  %v1686_v50 = vld [vmem:[%s2812_s7 + $0x18] sm:$0xff] }
 0x426   :  { %v2254_v51 = vpop.eup %2253  ;;  %2115 = vmatpush3.msra.mxu0 %v1205_v37  ;;  %2116 = vmatprep.mubr.msk.f32.mxu0 %vm2398_vm1, %v2395_v10  ;;  %v1970_v37 = vld [vmem:[%s2809_s4] ss:$0 sm:$0xff] }
 0x427   :  { %v2256_v52 = vpop.eup %2255  ;;  %v896_v53 = vmul.f32 %v2254_v51, %v2238_v25  ;;  %2124 = vmatprep.subr.mxu0 %v2395_v10  ;;  %v2195_v51 = vpack.c.bf16 %v1686_v50, %v1685_v48 }
 0x428   :  { %v895_v54 = vmul.f32 %v2256_v52, %v2240_v26  ;;  %v1357_v55 = vpop.permute.xlu0 %1356  ;;  %v1775_v52 = vld [vmem:[%s2814_s9] sm:$0xff] }
 0x429   :  { %2117 = vmatmul.mubr.msk.f32.vlgmr.msra.gmra.mrb[10].mxu0 %vm205_vm2, %v896_v53  ;;  %v1776_v53 = vld [vmem:[%s2814_s9 + $0x8] sm:$0xff] }
 0x42a   :  { %v2258_v56 = vpop.eup %2257  ;;  %2112 = vmatmul.mubr.msk.f32.vlgmr.msra.gmra.mrb[14].mxu1 %vm205_vm2, %v895_v54  ;;  %2125 = vmatpush3.msra.mxu0 %v1357_v55  ;;  %v1777_v54 = vld [vmem:[%s2814_s9 + $0x10] sm:$0xff]  ;;  %v2199_v55 = vpack.c.bf16 %v1776_v53, %v1775_v52 }
 0x42b   :  { %v2260_v57 = vpop.eup %2259  ;;  %v898_v58 = vmul.f32 %v2258_v56, %v2242_v29  ;;  %2120 = vmatpush3.msra.mxu1 %v1281_v38  ;;  %2121 = vmatprep.mubr.msk.f32.mxu1 %vm2398_vm1, %v2395_v10  ;;  %v1778_v56 = vld [vmem:[%s2814_s9 + $0x18] sm:$0xff] }
 0x42c   :  { %v897_v59 = vmul.f32 %v2260_v57, %v2244_v30  ;;  %2126 = vmatprep.mubr.msk.f32.mxu0 %vm2398_vm1, %v2395_v10  ;;  %2129 = vmatprep.subr.mxu1 %v2395_v10  ;;  %v2203_v57 = vpack.c.bf16 %v1778_v56, %v1777_v54 }
 0x42d   :  { %2127 = vmatmul.mubr.msk.f32.vlgmr.msra.gmra.mrb[12].mxu0 %vm205_vm2, %v898_v58  ;;  %2184 = vmatprep.subr.bf16.mxu0 %v2183_v6  ;;  %v1779_v58 = vld [vmem:[%s2814_s9 + $0x20] sm:$0xff] }
 0x42e   :  { %2122 = vmatmul.mubr.msk.f32.vlgmr.msra.gmra.mrb[16].mxu1 %vm205_vm2, %v897_v59  ;;  %2186 = vmatpush3.bf16.msra.mxu0 %v2183_v6  ;;  %v1780_v59 = vld [vmem:[%s2814_s9 + $0x28] sm:$0xff] }
 0x42f   :  { %v2262_v61 = vpop.eup %2261  ;;  %2130 = vmatpush3.msra.mxu1 %v1433_v60  ;;  %2131 = vmatprep.mubr.msk.f32.mxu1 %vm2398_vm1, %v2395_v10  ;;  %v1542_v10 = vld [vmem:[%s2808_s3 + $0x10] sm:$0xff]  ;;  %v2207_v60 = vpack.c.bf16 %v1780_v59, %v1779_v58 }
 0x430   :  { %v899_v62 = vmul.f32 %v2262_v61, %v2675_v33  ;;  %v2187_v9 = vpack.c.bf16 %v1543_v8, %v1542_v10 }
 0x432   :  { %2132 = vmatmul.mubr.msk.f32.vlgmr.msra.gmra.mrb[18].mxu1 %vm205_vm2, %v899_v62  ;;  %2188 = vmatprep.subr.bf16.mxu0 %v2187_v9 }
 0x433   :  { %2190 = vmatpush3.bf16.msra.mxu0 %v2187_v9 }
 0x434   :  { %2200 = vmatprep.subr.bf16.mxu0 %v2199_v55 }
 0x49f   :  { %v1048_v63 = vpop.f32.mrb[12].mxu1 }
 0x4a0   :  { %v2103_v0 = vpop.f32.mrb[13].mxu1 }
 0x4a3   :  { %v972_v1 = vpop.f32.mrb[6].mxu0 }
 0x4a4   :  { %v2098_v2 = vpop.f32.mrb[7].mxu0 }
 0x4f8   :  { %v1124_v11 = vpop.f32.mrb[8].mxu0 }
 0x4f9   :  { %v2108_v12 = vpop.f32.mrb[9].mxu0  ;;  %1510 = vrot.lane.b32.xlu0 %v1124_v11, %s2392_s26 }
 0x4fc   :  { %v1276_v13 = vpop.f32.mrb[10].mxu0 }
 0x4fd   :  { %v1200_v14 = vpop.f32.mrb[14].mxu1  ;;  %1518 = vrot.lane.b32.xlu0 %v1276_v13, %s2402_s0  ;;  %v2118_v15 = vpop.f32.mrb[11].mxu0 }
 0x4fe   :  { %1512 = vrot.lane.b32.xlu1 %v1200_v14, %s2392_s26  ;;  %v2113_v16 = vpop.f32.mrb[15].mxu1  ;;  %v1973_v15 = vld [vmem:[#allocation5] ss:$0 sm:$0xff] }
 0x500   :  { %v1428_v17 = vpop.f32.mrb[12].mxu0 }
 0x501   :  { %v1352_v20 = vpop.f32.mrb[16].mxu1  ;;  %1526 = vrot.lane.b32.xlu0 %v1428_v17, %s2403_s28  ;;  %v2128_v21 = vpop.f32.mrb[13].mxu0  ;;  %v1974_v17 = vld [vmem:[#allocation7] ss:$0 sm:$0xff] }
 0x502   :  { %1520 = vrot.lane.b32.xlu1 %v1352_v20, %s2402_s0  ;;  %v2123_v22 = vpop.f32.mrb[17].mxu1 }
 0x505   :  { %v1504_v23 = vpop.f32.mrb[18].mxu1 }
 0x506   :  { %1528 = vrot.lane.b32.xlu1 %v1504_v23, %s2403_s28  ;;  %v2133_v24 = vpop.f32.mrb[19].mxu1 }
 0x56b   :  { %v1511_v25 = vpop.permute.xlu0 %1510 }
 0x56c   :  { %v1532_v28 = vsel %vm205_vm2, %v972_v1, %v1511_v25 }
 0x56f   :  { %v1519_v26 = vpop.permute.xlu0 %1518 }
 0x570   :  { %v1513_v27 = vpop.permute.xlu1 %1512  ;;  %v1535_v29 = vsel %vm1534_vm3, %v1532_v28, %v1519_v26  ;;  %v1782_v28 = vld [vmem:[%s2814_s9 + $0x38] sm:$0xff] }
 0x571   :  { %v1533_v33 = vsel %vm205_vm2, %v1048_v63, %v1513_v27  ;;  %v1781_v27 = vld [vmem:[%s2814_s9 + $0x30] sm:$0xff] }
 0x573   :  { %v1527_v30 = vpop.permute.xlu0 %1526 }
 0x574   :  { %v1521_v31 = vpop.permute.xlu1 %1520  ;;  %v1538_v32 = vsel %vm1537_vm4, %v1535_v29, %v1527_v30  ;;  %v2211_v29 = vpack.c.bf16 %v1782_v28, %v1781_v27  ;;  %v1975_v30 = vld [vmem:[#allocation8] ss:$0 sm:$0xff] }
 0x575   :  { %2142 = vmatprep.mubr.msk.f32.mxu0 %vm107_vm0, %v1538_v32  ;;  %v1536_v34 = vsel %vm1534_vm3, %v1533_v33, %v1521_v31 }
 0x578   :  { %v1529_v35 = vpop.permute.xlu1 %1528 }
 0x579   :  { %v1539_v36 = vsel %vm1537_vm4, %v1536_v34, %v1529_v35  ;;  %v1978_v35 = vld [vmem:[%s2815_s10] ss:$0 sm:$0xff] }
 0x57a   :  { %2143 = vmatmul.mubr.msk.f32.vlgmr.msra.gmra.mrb[14].mxu0 %vm107_vm0, %v1539_v36 }
 0x57b   :  { %2202 = vmatpush3.bf16.msra.mxu0 %v2199_v55 }
 0x57c   :  { %2204 = vmatprep.subr.bf16.mxu0 %v2203_v57 }
 0x57f   :  { %2206 = vmatpush3.bf16.msra.mxu0 %v2203_v57 }
 0x580   :  { %2208 = vmatprep.subr.bf16.mxu0 %v2207_v60 }
 0x583   :  { %2210 = vmatpush3.bf16.msra.mxu0 %v2207_v60 }
 0x584   :  { %2212 = vmatprep.subr.bf16.mxu0 %v2211_v29 }
 0x587   :  { %2214 = vmatpush3.bf16.msra.mxu0 %v2211_v29 }
 0x64d   :  { %v2144_v38 = vpop.f32.mrb[14].mxu0 }
 0x64e   :  { %v1629_v39 = vadd.f32 %v2144_v38, %v1970_v37  ;;  %v1623_v40 = vpop.f32.mrb[15].mxu0 }
 0x64f   :  { %v1624_v41 = vadd.f32 %v1970_v37, %v1623_v40 }
 0x650   :  { %v1633_v42 = vadd.f32 %v1629_v39, %v2549_v7  ;;  %v1683_v7 = vld [vmem:[%s2812_s7] sm:$0xff] }
 0x651   :  { %v1632_v43 = vadd.f32 %v1624_v41, %v2545_v5  ;;  %v1684_v5 = vld [vmem:[%s2812_s7 + $0x8] sm:$0xff] }
 0x652   :  { %v1639_v18 = vsel %vm107_vm0, %v1633_v42, 0.0  ;;  %v1646_v46 = vmul.f32 %v1633_v42, %v1633_v42  ;;  %v2191_v49 = vpack.c.bf16 %v1684_v5, %v1683_v7 }
 0x653   :  { %1640 = vadd.xlane.f32.xlu1 %v1639_v18  ;;  %v1636_v19 = vsel %vm107_vm0, %v1632_v43, 0.0  ;;  %v1645_v44 = vmul.f32 %v1632_v43, %v1632_v43 }
 0x654   :  { %1637 = vadd.xlane.f32.xlu0 %v1636_v19  ;;  %v1650_v47 = vsel %vm107_vm0, %v1646_v46, 0.0  ;;  %2192 = vmatprep.subr.bf16.mxu1 %v2191_v49 }
 0x655   :  { %v1647_v45 = vsel %vm107_vm0, %v1645_v44, 0.0  ;;  %2194 = vmatpush3.bf16.msra.mxu1 %v2191_v49 }
 0x656   :  { %2196 = vmatprep.subr.bf16.mxu1 %v2195_v51 }
 0x658   :  { %1648 = vadd.xlane.f32.xlu0 %v1647_v45 }
 0x659   :  { %2198 = vmatpush3.bf16.msra.mxu1 %v2195_v51 }
 0x65c   :  { %1651 = vadd.xlane.f32.xlu0 %v1650_v47 }
 0x6e0   :  { %v1641_v63 = vpop.xlane.xlu1 %1640 }
 0x6e1   :  { %v1638_v61 = vpop.xlane.xlu0 %1637  ;;  %v1644_v1 = vmul.f32 0.03125, %v1641_v63 }
 0x6e2   :  { %v1643_v62 = vmul.f32 0.03125, %v1638_v61  ;;  %v1981_v61 = vld [vmem:[%s2816_s11] ss:$0 sm:$0xff] }
 0x6e3   :  { %v1656_v10 = vmul.f32 %v1644_v1, %v1644_v1  ;;  %v1660_v20 = vsub.f32 %v1633_v42, %v1644_v1 }
 0x6e4   :  { %v1655_v2 = vmul.f32 %v1643_v62, %v1643_v62  ;;  %v1659_v13 = vsub.f32 %v1632_v43, %v1643_v62 }
 0x6e5   :  { %v1649_v0 = vpop.xlane.xlu0 %1648 }
 0x6e6   :  { %v1653_v3 = vmul.f32 0.03125, %v1649_v0  ;;  %v1982_v0 = vld [vmem:[%s2817_s12] ss:$0 sm:$0xff] }
 0x6e8   :  { %v1657_v4 = vsub.f32 %v1653_v3, %v1655_v2 }
 0x6e9   :  { %v1652_v6 = vpop.xlane.xlu0 %1651 }
 0x6ea   :  { %v1661_v8 = vadd.f32 1e-05, %v1657_v4  ;;  %v1654_v9 = vmul.f32 0.03125, %v1652_v6 }
 0x6ec   :  { %2263 = vrsqrt.f32 %v1661_v8  ;;  %v1658_v11 = vsub.f32 %v1654_v9, %v1656_v10 }
 0x6ee   :  { %v1662_v12 = vadd.f32 1e-05, %v1658_v11 }
 0x6f0   :  { %2265 = vrsqrt.f32 %v1662_v12 }
 0x6f6   :  { %v2264_v14 = vpop.eup %2263 }
 0x6f7   :  { %v1665_v16 = vmul.f32 %v2264_v14, %v1659_v13 }
 0x6f9   :  { %v1673_v21 = vmul.f32 %v1973_v15, %v1665_v16 }
 0x6fa   :  { %v2266_v22 = vpop.eup %2265 }
 0x6fb   :  { %v1666_v23 = vmul.f32 %v2266_v22, %v1660_v20  ;;  %v1681_v24 = vadd.f32 %v1974_v17, %v1673_v21 }
 0x6fd   :  { %v1674_v25 = vmul.f32 %v1973_v15, %v1666_v23  ;;  %2153 = vmatprep.mubr.msk.f32.mxu1 %vm107_vm0, %v1681_v24 }
 0x6ff   :  { %v1682_v26 = vadd.f32 %v1974_v17, %v1674_v25 }
 0x701   :  { %2154 = vmatmul.mubr.msk.f32.vlgmr.msra.gmra.mrb[20].mxu1 %vm107_vm0, %v1682_v26 }
 0x7d4   :  { %v2155_v31 = vpop.f32.mrb[20].mxu1 }
 0x7d5   :  { %v1766_v32 = vpop.f32.mrb[21].mxu1  ;;  %v1772_v34 = vadd.f32 %v2155_v31, %v1975_v30 }
 0x7d6   :  { %v1767_v33 = vadd.f32 %v1975_v30, %v1766_v32 }
 0x7d8   :  { %2172 = vmatprep.mubr.msk.f32.mxu0 %vm1790_vm5, %v1767_v33 }
 0x7d9   :  { %2173 = vmatmul.mubr.msk.f32.vlgmr.msra.gmra.mrb[16].mxu0 %vm1790_vm5, %v1772_v34 }
 0x8ac   :  { %v2174_v36 = vpop.f32.mrb[16].mxu0 }
 0x8ad   :  { %v1869_v37 = vadd.f32 %v2174_v36, %v1978_v35  ;;  %v1863_v38 = vpop.f32.mrb[17].mxu0 }
 0x8ae   :  { %v1864_v39 = vadd.f32 %v1978_v35, %v1863_v38 }
 0x8af   :  { %v1873_v40 = vadd.f32 %v1869_v37, %v1682_v26 }
 0x8b0   :  { %v1872_v41 = vadd.f32 %v1864_v39, %v1681_v24 }
 0x8b1   :  { %v1879_v42 = vsel %vm107_vm0, %v1873_v40, 0.0  ;;  %v1885_v43 = vmul.f32 %v1873_v40, %v1873_v40 }
 0x8b2   :  { %1880 = vadd.xlane.f32.xlu0 %v1879_v42  ;;  %v1876_v18 = vsel %vm107_vm0, %v1872_v41, 0.0  ;;  %v1884_v19 = vmul.f32 %v1872_v41, %v1872_v41 }
 0x8b3   :  { %1877 = vadd.xlane.f32.xlu1 %v1876_v18  ;;  %v1889_v44 = vsel %vm107_vm0, %v1885_v43, 0.0 }
 0x8b4   :  { %v1886_v45 = vsel %vm107_vm0, %v1884_v19, 0.0 }
 0x8b6   :  { %1890 = vadd.xlane.f32.xlu0 %v1889_v44 }
 0x8b7   :  { %1887 = vadd.xlane.f32.xlu1 %v1886_v45 }
 0x93f   :  { %v1881_v46 = vpop.xlane.xlu0 %1880 }
 0x940   :  { %v1883_v47 = vmul.f32 0.03125, %v1881_v46  ;;  %v1878_v7 = vpop.xlane.xlu1 %1877 }
 0x941   :  { %v1882_v5 = vmul.f32 0.03125, %v1878_v7 }
 0x942   :  { %v1895_v49 = vmul.f32 %v1883_v47, %v1883_v47  ;;  %v1899_v58 = vsub.f32 %v1873_v40, %v1883_v47 }
 0x943   :  { %v1891_v48 = vpop.xlane.xlu0 %1890  ;;  %v1894_v52 = vmul.f32 %v1882_v5, %v1882_v5  ;;  %v1898_v60 = vsub.f32 %v1872_v41, %v1882_v5 }
 0x944   :  { %v1893_v50 = vmul.f32 0.03125, %v1891_v48  ;;  %v1888_v51 = vpop.xlane.xlu1 %1887 }
 0x945   :  { %v1892_v53 = vmul.f32 0.03125, %v1888_v51 }
 0x946   :  { %v1897_v54 = vsub.f32 %v1893_v50, %v1895_v49 }
 0x947   :  { %v1896_v55 = vsub.f32 %v1892_v53, %v1894_v52 }
 0x948   :  { %v1901_v56 = vadd.f32 1e-05, %v1897_v54 }
 0x949   :  { %v1900_v57 = vadd.f32 1e-05, %v1896_v55 }
 0x94a   :  { %2267 = vrsqrt.f32 %v1901_v56 }
 0x94b   :  { %2269 = vrsqrt.f32 %v1900_v57 }
 0x954   :  { %v2268_v59 = vpop.eup %2267 }
 0x955   :  { %v2270_v62 = vpop.eup %2269  ;;  %v1905_v63 = vmul.f32 %v2268_v59, %v1899_v58 }
 0x956   :  { %v1904_v1 = vmul.f32 %v2270_v62, %v1898_v60 }
 0x957   :  { %v1913_v2 = vmul.f32 %v1981_v61, %v1905_v63 }
 0x958   :  { %v1912_v3 = vmul.f32 %v1981_v61, %v1904_v1 }
 0x959   :  { %v1921_v4 = vadd.f32 %v1982_v0, %v1913_v2 }
 0x95a   :  { %v1920_v6 = vadd.f32 %v1982_v0, %v1912_v3 }
 0x95b   :  { %1923 = vst.msk [vmem:[#allocation10 + $0x8] sm:$0xff] %vm107_vm0, %v1921_v4 }
 0x95c   :  { %1922 = vst.msk [vmem:[#allocation10] sm:$0xff] %vm107_vm0, %v1920_v6 }
 0x95d   :  { %2370 = shalt.err (!%p2367_p8)
}
 0x95e   :  { %s2371_s18 = scalar_lea.hbm %s2818_s13, 256 }
 0x95f   :  { %p2372_p9 = scmp.ne.s32.totalorder %s2818_s13, %s2371_s18  ;;  %p2375_p10 = scmp.lt.u32.totalorder %s2371_s18, %s2818_s13 }
 0x961   :  { %p2377_p11 = pnand %p2375_p10, %p2372_p9 }
 0x963   :  { %2380 = shalt.err (!%p2377_p11)
}
 0x964   :  { %1935 = dma.vmem_to_hbm [thread:$0]  %s1930_s17, 256, %s2818_s13, [#allocation4], %s2391_s5, %s2391_s5, %s2392_s26  }
 0x965   :  { %2387 = dma.done.wait [#allocation4], 256  }
 0x966   :  { %2388 = vsyncadd [#allocation4], 4294967040 }
 0x967   :  { %1939 = vsyncpa [#allocation3], 1 }
 0x968   :  { %1940 = vsyncpa [#allocation6], 1 }
 0x969   :  { %1941 = vsyncpa [#allocation9], 1 }
 0x96a   :  { %1942 = vsyncpa [#allocation4], 1 }

</bundles_post_ra>
